<compile_context>
chip_gen: v5e
topology: v5e:2x2
jax: 0.10.0
libtpu: 0.0.40
codegen_flags: <defaults>
</compile_context>

<pallas_src>
import numpy as np
import jax
import jax.numpy as jnp
from jax.experimental import pallas as pl
from jax.experimental.pallas import tpu as pltpu


def _segment_boundaries(nT, n_segments):
    # Reproduce exactly: t_vec = np.linspace(1, nT, n_segments + 1)
    #                    t_vec = [int(round(x)) for x in t_vec]
    t_vec = np.linspace(1, nT, n_segments + 1)
    return [int(round(x)) for x in t_vec]


def _round_up(a, b):
    return ((a + b - 1) // b) * b


def _vmem_capacity_bytes():
    """Physical VMEM of the local TPU; conservative (v7x) fallback."""
    try:
        info = pltpu.get_tpu_info()
        cap = getattr(info, "vmem_capacity_bytes", None)
        if cap:
            return int(cap)
    except Exception:
        pass
    return 64 * 1024 * 1024


def _segment_constants(t_vec, T, S):
    """Exact 0/±1 selector matrices, baked as numpy at trace time."""
    ssel = np.zeros((T, S), np.float32)      # picks the segment-start point
    dmat = np.zeros((T, S), np.float32)      # end - start (level-1 increment)
    ind = np.zeros((max(T - 1, 1), S), np.float32)  # step -> segment indicator
    for k in range(S):
        s = t_vec[k] - 1
        e = t_vec[k + 1] - 1
        ssel[s, k] = 1.0
        dmat[e, k] += 1.0
        dmat[s, k] -= 1.0
        if e > s:
            ind[s:e, k] = 1.0
    return ssel, dmat, ind


def _kernel_vmem_bytes(bblk, T, C, S, n_pairs, lc, in_itemsize):
    """Lane/sublane-padded VMEM estimate for one batch tile (f32 temps)."""
    r8 = lambda v: _round_up(max(int(v), 1), 8)
    rl = lambda v: _round_up(max(int(v), 1), 128)
    rows = r8(bblk)
    Tl, Sl = rl(T), rl(S)
    b = 0
    b += 2 * C * rows * Tl * max(int(in_itemsize), 2)   # input block, double buffered
    b += 2 * lc * rows * Sl * 4                          # output block, double buffered
    b += C * rows * (3 * Tl + Sl) * 4                    # per-channel xc / z / dx / xs
    b += rows * (2 * Tl + 2 * Sl) * 4                    # transient pair product + dot result
    b += 10 * r8(T) * 128 * 4                            # tiny selector constants (padded)
    b += 2 << 20                                         # compiler scratch slack
    return b


def _choose_bblk(B, T, C, S, n_pairs, lc, in_itemsize, budget):
    fits = lambda bb: _kernel_vmem_bytes(bb, T, C, S, n_pairs, lc, in_itemsize) <= budget
    if fits(B):
        # Whole batch in one step when it fits; on v7x (2 TensorCores) prefer
        # two parallel steps when that costs no padding.
        if B >= 16 and B % 16 == 0 and fits(B // 2):
            return B // 2
        return B
    bb = (B // 8) * 8
    while bb >= 8 and not fits(bb):
        bb -= 8
    return max(bb, 8)


def _make_kernel(T, C, S, pairs):
    lc = C + len(pairs)
    prec = jax.lax.Precision.HIGHEST  # MXU is otherwise idle; keep f32 accuracy

    def kernel(x_ref, ssel_ref, dmat_ref, ind_ref, indt_ref, out_ref):
        # x_ref   : (C, bblk, T)   channel-major path, time on lanes
        # ssel    : (T, S)  start-point selector        dmat : (T, S) end-start
        # ind     : (T-1, S) step->segment indicator    indt : (S, T-1)
        # out_ref : (lc, bblk, S)  [level-1 channels | Levy-area pairs]
        ssel = ssel_ref[...]
        dmat = dmat_ref[...]
        ind = ind_ref[...]
        indt = indt_ref[...]

        z, dx = [], []
        for c in range(C):
            xc = x_ref[c].astype(jnp.float32)            # (bblk, T) lane-dense
            # Segment-start values and level-1 increments: one MXU contraction
            # each against an exact 0/±1 selector (no per-segment slicing).
            xs_c = jnp.dot(xc, ssel, precision=prec,
                           preferred_element_type=jnp.float32)        # (bblk, S)
            out_ref[c] = jnp.dot(xc, dmat, precision=prec,
                                 preferred_element_type=jnp.float32)  # (bblk, S)
            # Broadcast each segment's start value to its own steps: the path
            # is rebased per segment (fixes the f32 cancellation concern).
            st_c = jnp.dot(xs_c, indt, precision=prec,
                           preferred_element_type=jnp.float32)        # (bblk, T-1)
            z.append(xc[:, :T - 1] - st_c)
            dx.append(xc[:, 1:] - xc[:, :T - 1])

        # Levy areas: antisymmetric step products on the VPU (lane-dense over
        # time), reduced over time with a single indicator matmul per pair.
        # TODO(synk): for large C (>= ~16) switch to a batched outer-product
        # (MXU) formulation instead of the per-pair Python unroll.
        for p, (i, j) in enumerate(pairs):
            pp = z[i] * dx[j] - z[j] * dx[i]                          # (bblk, T-1)
            out_ref[C + p] = 0.5 * jnp.dot(pp, ind, precision=prec,
                                           preferred_element_type=jnp.float32)

    return kernel


def logsig_forward(inp, n_segments, logsig_depth, logsig_channels):
    """JAX/Pallas equivalent of LogSig.forward. inp: (B, T, C) -> (B, S, lc)."""
    assert logsig_depth == 2, "only depth-2 log-signature is implemented"
    # TODO(synk): log-signature depths > 2 (higher Lyndon levels) not implemented.
    B, T, C = inp.shape
    assert T >= 2, "need at least two path points"
    S = int(n_segments)
    n_pairs = C * (C - 1) // 2
    lc = C + n_pairs
    assert logsig_channels == lc, "inconsistent logsig_channels for depth 2"

    t_vec = _segment_boundaries(T, S)
    ssel_np, dmat_np, ind_np = _segment_constants(t_vec, T, S)
    pairs = [(i, j) for i in range(C) for j in range(i + 1, C)]

    # Channel-major layout (C, B, T): inside the kernel time sits on the
    # 128-lane axis and each channel is one contiguous leading-index slab.
    # (One wrapper-side relayout of the input, traded for lane-dense compute.)
    xT = jnp.transpose(inp, (2, 0, 1))

    cap = _vmem_capacity_bytes()
    vmem_limit = int(min(cap * 3 // 4, 96 * 1024 * 1024))
    budget = vmem_limit // 2
    bblk = _choose_bblk(B, T, C, S, n_pairs, lc, inp.dtype.itemsize, budget)
    b_pad = _round_up(B, bblk)
    if b_pad != B:  # only pads the ragged tail block (avoided when bblk | B)
        xT = jnp.pad(xT, ((0, 0), (0, b_pad - B), (0, 0)))

    kernel = _make_kernel(T, C, S, pairs)
    out = pl.pallas_call(
        kernel,
        out_shape=jax.ShapeDtypeStruct((lc, b_pad, S), jnp.float32),
        grid=(b_pad // bblk,),
        in_specs=[
            pl.BlockSpec((C, bblk, T), lambda b: (0, b, 0)),
            pl.BlockSpec((T, S), lambda b: (0, 0)),
            pl.BlockSpec((T, S), lambda b: (0, 0)),
            pl.BlockSpec((T - 1, S), lambda b: (0, 0)),
            pl.BlockSpec((S, T - 1), lambda b: (0, 0)),
        ],
        out_specs=pl.BlockSpec((lc, bblk, S), lambda b: (0, b, 0)),
        compiler_params=pltpu.CompilerParams(
            dimension_semantics=("parallel",),
            vmem_limit_bytes=vmem_limit),
    )(xT,
      jnp.asarray(ssel_np),
      jnp.asarray(dmat_np),
      jnp.asarray(ind_np),
      jnp.asarray(np.ascontiguousarray(ind_np.T)))

    # (lc, B_pad, S) -> (B, S, lc): tiny output-sized rearrangement in XLA.
    return jnp.transpose(out, (1, 2, 0))[:B]


def _reference_numpy(x, n_segments):
    """Pure-numpy depth-2 log-signature reference (same math as signatory)."""
    B, T, C = x.shape
    t_vec = _segment_boundaries(T, n_segments)
    iu0, iu1 = np.triu_indices(C, k=1)
    outs = []
    for i in range(n_segments):
        seg = x[:, t_vec[i] - 1:t_vec[i + 1], :]
        inc = seg[:, -1, :] - seg[:, 0, :]
        dx = seg[:, 1:, :] - seg[:, :-1, :]
        xr = seg[:, :-1, :] - seg[:, :1, :]
        M = np.einsum('bti,btj->bij', xr, dx)
        A = 0.5 * (M - np.swapaxes(M, 1, 2))
        outs.append(np.concatenate([inc, A[:, iu0, iu1]], axis=-1)[:, None, :])
    return np.concatenate(outs, axis=1)


if __name__ == "__main__":
    # Small shapes consistent with the module's forward.
    B, T, C = 2, 16, 4
    n_segments = 4
    logsig_depth = 2
    logsig_channels = C + C * (C - 1) // 2  # = 10

    key = jax.random.PRNGKey(0)
    inp = jax.random.normal(key, (B, T, C), dtype=jnp.float32)

    out = logsig_forward(inp, n_segments, logsig_depth, logsig_channels)
    out = jax.block_until_ready(out)

    assert out.shape == (B, n_segments, logsig_channels), out.shape
    ref = _reference_numpy(np.asarray(inp, dtype=np.float32), n_segments)
    np.testing.assert_allclose(np.asarray(out), ref, rtol=2e-4, atol=2e-4)

    print("KERNEL_OK")
</pallas_src>

<mosaic_0001>
module attributes {stable_mosaic.version = 11 : i64} {
  func.func @kernel(%arg0: i32, %arg1: memref<4x2x16xf32, #tpu.memory_space<vmem>>, %arg2: memref<16x4xf32, #tpu.memory_space<vmem>>, %arg3: memref<16x4xf32, #tpu.memory_space<vmem>>, %arg4: memref<15x4xf32, #tpu.memory_space<vmem>>, %arg5: memref<4x15xf32, #tpu.memory_space<vmem>>, %arg6: memref<10x2x4xf32, #tpu.memory_space<vmem>>) attributes {dimension_semantics = [#tpu.dimension_semantics<parallel>], iteration_bounds = array<i64: 1>, scalar_prefetch = 0 : i64, scratch_operands = 0 : i64, tpu.core_type = #tpu.core_type<tc>, window_params = [{transform_indices = @transform_0, window_bounds = array<i64: 4, 2, 16>}, {pipeline_mode = #tpu.pipeline_mode<synchronous>, transform_indices = @transform_1, window_bounds = array<i64: 16, 4>}, {pipeline_mode = #tpu.pipeline_mode<synchronous>, transform_indices = @transform_2, window_bounds = array<i64: 16, 4>}, {pipeline_mode = #tpu.pipeline_mode<synchronous>, transform_indices = @transform_3, window_bounds = array<i64: 15, 4>}, {pipeline_mode = #tpu.pipeline_mode<synchronous>, transform_indices = @transform_4, window_bounds = array<i64: 4, 15>}, {transform_indices = @transform_5, window_bounds = array<i64: 10, 2, 4>}]} {
    %c0 = arith.constant 0 : index
    %c0_0 = arith.constant 0 : index
    %0 = vector.load %arg2[%c0, %c0_0] : memref<16x4xf32, #tpu.memory_space<vmem>>, vector<16x4xf32>
    %c0_1 = arith.constant 0 : index
    %c0_2 = arith.constant 0 : index
    %1 = vector.load %arg3[%c0_1, %c0_2] : memref<16x4xf32, #tpu.memory_space<vmem>>, vector<16x4xf32>
    %c0_3 = arith.constant 0 : index
    %c0_4 = arith.constant 0 : index
    %2 = vector.load %arg4[%c0_3, %c0_4] : memref<15x4xf32, #tpu.memory_space<vmem>>, vector<15x4xf32>
    %c0_5 = arith.constant 0 : index
    %c0_6 = arith.constant 0 : index
    %3 = vector.load %arg5[%c0_5, %c0_6] : memref<4x15xf32, #tpu.memory_space<vmem>>, vector<4x15xf32>
    %c0_7 = arith.constant 0 : index
    %c0_8 = arith.constant 0 : index
    %c0_9 = arith.constant 0 : index
    %4 = vector.load %arg1[%c0_7, %c0_8, %c0_9] : memref<4x2x16xf32, #tpu.memory_space<vmem>>, vector<1x2x16xf32>
    %5 = vector.shape_cast %4 : vector<1x2x16xf32> to vector<2x16xf32>
    %cst = arith.constant dense<0.000000e+00> : vector<2x4xf32>
    %6 = tpu.matmul %5, %0, %cst {dimension_numbers = #tpu.dot_dimension_numbers<[1], [0], [0], [1], [0, 0, 1, 1], [], []>, precision = #tpu.contract_precision<fp32>} : vector<2x16xf32>, vector<16x4xf32>, vector<2x4xf32> -> vector<2x4xf32>
    %cst_10 = arith.constant dense<0.000000e+00> : vector<2x4xf32>
    %7 = tpu.matmul %5, %1, %cst_10 {dimension_numbers = #tpu.dot_dimension_numbers<[1], [0], [0], [1], [0, 0, 1, 1], [], []>, precision = #tpu.contract_precision<fp32>} : vector<2x16xf32>, vector<16x4xf32>, vector<2x4xf32> -> vector<2x4xf32>
    %c0_11 = arith.constant 0 : index
    %c0_12 = arith.constant 0 : index
    %c0_13 = arith.constant 0 : index
    %8 = vector.load %arg6[%c0_11, %c0_12, %c0_13] : memref<10x2x4xf32, #tpu.memory_space<vmem>>, vector<1x2x4xf32>
    %9 = vector.shape_cast %8 : vector<1x2x4xf32> to vector<2x4xf32>
    %10 = vector.shape_cast %7 : vector<2x4xf32> to vector<1x2x4xf32>
    tpu.vector_store %arg6[%c0_11, %c0_12, %c0_13], %10 {strides = array<i32>} : memref<10x2x4xf32, #tpu.memory_space<vmem>>, vector<1x2x4xf32>,
    %cst_14 = arith.constant dense<0.000000e+00> : vector<2x15xf32>
    %11 = tpu.matmul %6, %3, %cst_14 {dimension_numbers = #tpu.dot_dimension_numbers<[1], [0], [0], [1], [0, 0, 1, 1], [], []>, precision = #tpu.contract_precision<fp32>} : vector<2x4xf32>, vector<4x15xf32>, vector<2x15xf32> -> vector<2x15xf32>
    %12 = vector.extract_strided_slice %5 {offsets = [0, 0], sizes = [2, 15], strides = [1, 1]} : vector<2x16xf32> to vector<2x15xf32>
    %13 = arith.subf %12, %11 : vector<2x15xf32>
    %14 = vector.extract_strided_slice %5 {offsets = [0, 1], sizes = [2, 15], strides = [1, 1]} : vector<2x16xf32> to vector<2x15xf32>
    %15 = vector.extract_strided_slice %5 {offsets = [0, 0], sizes = [2, 15], strides = [1, 1]} : vector<2x16xf32> to vector<2x15xf32>
    %16 = arith.subf %14, %15 : vector<2x15xf32>
    %c1 = arith.constant 1 : index
    %c0_15 = arith.constant 0 : index
    %c0_16 = arith.constant 0 : index
    %17 = vector.load %arg1[%c1, %c0_15, %c0_16] : memref<4x2x16xf32, #tpu.memory_space<vmem>>, vector<1x2x16xf32>
    %18 = vector.shape_cast %17 : vector<1x2x16xf32> to vector<2x16xf32>
    %cst_17 = arith.constant dense<0.000000e+00> : vector<2x4xf32>
    %19 = tpu.matmul %18, %0, %cst_17 {dimension_numbers = #tpu.dot_dimension_numbers<[1], [0], [0], [1], [0, 0, 1, 1], [], []>, precision = #tpu.contract_precision<fp32>} : vector<2x16xf32>, vector<16x4xf32>, vector<2x4xf32> -> vector<2x4xf32>
    %cst_18 = arith.constant dense<0.000000e+00> : vector<2x4xf32>
    %20 = tpu.matmul %18, %1, %cst_18 {dimension_numbers = #tpu.dot_dimension_numbers<[1], [0], [0], [1], [0, 0, 1, 1], [], []>, precision = #tpu.contract_precision<fp32>} : vector<2x16xf32>, vector<16x4xf32>, vector<2x4xf32> -> vector<2x4xf32>
    %c1_19 = arith.constant 1 : index
    %c0_20 = arith.constant 0 : index
    %c0_21 = arith.constant 0 : index
    %21 = vector.load %arg6[%c1_19, %c0_20, %c0_21] : memref<10x2x4xf32, #tpu.memory_space<vmem>>, vector<1x2x4xf32>
    %22 = vector.shape_cast %21 : vector<1x2x4xf32> to vector<2x4xf32>
    %23 = vector.shape_cast %20 : vector<2x4xf32> to vector<1x2x4xf32>
    tpu.vector_store %arg6[%c1_19, %c0_20, %c0_21], %23 {strides = array<i32>} : memref<10x2x4xf32, #tpu.memory_space<vmem>>, vector<1x2x4xf32>,
    %cst_22 = arith.constant dense<0.000000e+00> : vector<2x15xf32>
    %24 = tpu.matmul %19, %3, %cst_22 {dimension_numbers = #tpu.dot_dimension_numbers<[1], [0], [0], [1], [0, 0, 1, 1], [], []>, precision = #tpu.contract_precision<fp32>} : vector<2x4xf32>, vector<4x15xf32>, vector<2x15xf32> -> vector<2x15xf32>
    %25 = vector.extract_strided_slice %18 {offsets = [0, 0], sizes = [2, 15], strides = [1, 1]} : vector<2x16xf32> to vector<2x15xf32>
    %26 = arith.subf %25, %24 : vector<2x15xf32>
    %27 = vector.extract_strided_slice %18 {offsets = [0, 1], sizes = [2, 15], strides = [1, 1]} : vector<2x16xf32> to vector<2x15xf32>
    %28 = vector.extract_strided_slice %18 {offsets = [0, 0], sizes = [2, 15], strides = [1, 1]} : vector<2x16xf32> to vector<2x15xf32>
    %29 = arith.subf %27, %28 : vector<2x15xf32>
    %c2 = arith.constant 2 : index
    %c0_23 = arith.constant 0 : index
    %c0_24 = arith.constant 0 : index
    %30 = vector.load %arg1[%c2, %c0_23, %c0_24] : memref<4x2x16xf32, #tpu.memory_space<vmem>>, vector<1x2x16xf32>
    %31 = vector.shape_cast %30 : vector<1x2x16xf32> to vector<2x16xf32>
    %cst_25 = arith.constant dense<0.000000e+00> : vector<2x4xf32>
    %32 = tpu.matmul %31, %0, %cst_25 {dimension_numbers = #tpu.dot_dimension_numbers<[1], [0], [0], [1], [0, 0, 1, 1], [], []>, precision = #tpu.contract_precision<fp32>} : vector<2x16xf32>, vector<16x4xf32>, vector<2x4xf32> -> vector<2x4xf32>
    %cst_26 = arith.constant dense<0.000000e+00> : vector<2x4xf32>
    %33 = tpu.matmul %31, %1, %cst_26 {dimension_numbers = #tpu.dot_dimension_numbers<[1], [0], [0], [1], [0, 0, 1, 1], [], []>, precision = #tpu.contract_precision<fp32>} : vector<2x16xf32>, vector<16x4xf32>, vector<2x4xf32> -> vector<2x4xf32>
    %c2_27 = arith.constant 2 : index
    %c0_28 = arith.constant 0 : index
    %c0_29 = arith.constant 0 : index
    %34 = vector.load %arg6[%c2_27, %c0_28, %c0_29] : memref<10x2x4xf32, #tpu.memory_space<vmem>>, vector<1x2x4xf32>
    %35 = vector.shape_cast %34 : vector<1x2x4xf32> to vector<2x4xf32>
    %36 = vector.shape_cast %33 : vector<2x4xf32> to vector<1x2x4xf32>
    tpu.vector_store %arg6[%c2_27, %c0_28, %c0_29], %36 {strides = array<i32>} : memref<10x2x4xf32, #tpu.memory_space<vmem>>, vector<1x2x4xf32>,
    %cst_30 = arith.constant dense<0.000000e+00> : vector<2x15xf32>
    %37 = tpu.matmul %32, %3, %cst_30 {dimension_numbers = #tpu.dot_dimension_numbers<[1], [0], [0], [1], [0, 0, 1, 1], [], []>, precision = #tpu.contract_precision<fp32>} : vector<2x4xf32>, vector<4x15xf32>, vector<2x15xf32> -> vector<2x15xf32>
    %38 = vector.extract_strided_slice %31 {offsets = [0, 0], sizes = [2, 15], strides = [1, 1]} : vector<2x16xf32> to vector<2x15xf32>
    %39 = arith.subf %38, %37 : vector<2x15xf32>
    %40 = vector.extract_strided_slice %31 {offsets = [0, 1], sizes = [2, 15], strides = [1, 1]} : vector<2x16xf32> to vector<2x15xf32>
    %41 = vector.extract_strided_slice %31 {offsets = [0, 0], sizes = [2, 15], strides = [1, 1]} : vector<2x16xf32> to vector<2x15xf32>
    %42 = arith.subf %40, %41 : vector<2x15xf32>
    %c3 = arith.constant 3 : index
    %c0_31 = arith.constant 0 : index
    %c0_32 = arith.constant 0 : index
    %43 = vector.load %arg1[%c3, %c0_31, %c0_32] : memref<4x2x16xf32, #tpu.memory_space<vmem>>, vector<1x2x16xf32>
    %44 = vector.shape_cast %43 : vector<1x2x16xf32> to vector<2x16xf32>
    %cst_33 = arith.constant dense<0.000000e+00> : vector<2x4xf32>
    %45 = tpu.matmul %44, %0, %cst_33 {dimension_numbers = #tpu.dot_dimension_numbers<[1], [0], [0], [1], [0, 0, 1, 1], [], []>, precision = #tpu.contract_precision<fp32>} : vector<2x16xf32>, vector<16x4xf32>, vector<2x4xf32> -> vector<2x4xf32>
    %cst_34 = arith.constant dense<0.000000e+00> : vector<2x4xf32>
    %46 = tpu.matmul %44, %1, %cst_34 {dimension_numbers = #tpu.dot_dimension_numbers<[1], [0], [0], [1], [0, 0, 1, 1], [], []>, precision = #tpu.contract_precision<fp32>} : vector<2x16xf32>, vector<16x4xf32>, vector<2x4xf32> -> vector<2x4xf32>
    %c3_35 = arith.constant 3 : index
    %c0_36 = arith.constant 0 : index
    %c0_37 = arith.constant 0 : index
    %47 = vector.load %arg6[%c3_35, %c0_36, %c0_37] : memref<10x2x4xf32, #tpu.memory_space<vmem>>, vector<1x2x4xf32>
    %48 = vector.shape_cast %47 : vector<1x2x4xf32> to vector<2x4xf32>
    %49 = vector.shape_cast %46 : vector<2x4xf32> to vector<1x2x4xf32>
    tpu.vector_store %arg6[%c3_35, %c0_36, %c0_37], %49 {strides = array<i32>} : memref<10x2x4xf32, #tpu.memory_space<vmem>>, vector<1x2x4xf32>,
    %cst_38 = arith.constant dense<0.000000e+00> : vector<2x15xf32>
    %50 = tpu.matmul %45, %3, %cst_38 {dimension_numbers = #tpu.dot_dimension_numbers<[1], [0], [0], [1], [0, 0, 1, 1], [], []>, precision = #tpu.contract_precision<fp32>} : vector<2x4xf32>, vector<4x15xf32>, vector<2x15xf32> -> vector<2x15xf32>
    %51 = vector.extract_strided_slice %44 {offsets = [0, 0], sizes = [2, 15], strides = [1, 1]} : vector<2x16xf32> to vector<2x15xf32>
    %52 = arith.subf %51, %50 : vector<2x15xf32>
    %53 = vector.extract_strided_slice %44 {offsets = [0, 1], sizes = [2, 15], strides = [1, 1]} : vector<2x16xf32> to vector<2x15xf32>
    %54 = vector.extract_strided_slice %44 {offsets = [0, 0], sizes = [2, 15], strides = [1, 1]} : vector<2x16xf32> to vector<2x15xf32>
    %55 = arith.subf %53, %54 : vector<2x15xf32>
    %56 = arith.mulf %13, %29 : vector<2x15xf32>
    %57 = arith.mulf %26, %16 : vector<2x15xf32>
    %58 = arith.subf %56, %57 : vector<2x15xf32>
    %cst_39 = arith.constant dense<0.000000e+00> : vector<2x4xf32>
    %59 = tpu.matmul %58, %2, %cst_39 {dimension_numbers = #tpu.dot_dimension_numbers<[1], [0], [0], [1], [0, 0, 1, 1], [], []>, precision = #tpu.contract_precision<fp32>} : vector<2x15xf32>, vector<15x4xf32>, vector<2x4xf32> -> vector<2x4xf32>
    %cst_40 = arith.constant 5.000000e-01 : f32
    %60 = vector.broadcast %cst_40 : f32 to vector<2x4xf32>
    %61 = arith.mulf %60, %59 : vector<2x4xf32>
    %c4 = arith.constant 4 : index
    %c0_41 = arith.constant 0 : index
    %c0_42 = arith.constant 0 : index
    %62 = vector.load %arg6[%c4, %c0_41, %c0_42] : memref<10x2x4xf32, #tpu.memory_space<vmem>>, vector<1x2x4xf32>
    %63 = vector.shape_cast %62 : vector<1x2x4xf32> to vector<2x4xf32>
    %64 = vector.shape_cast %61 : vector<2x4xf32> to vector<1x2x4xf32>
    tpu.vector_store %arg6[%c4, %c0_41, %c0_42], %64 {strides = array<i32>} : memref<10x2x4xf32, #tpu.memory_space<vmem>>, vector<1x2x4xf32>,
    %65 = arith.mulf %13, %42 : vector<2x15xf32>
    %66 = arith.mulf %39, %16 : vector<2x15xf32>
    %67 = arith.subf %65, %66 : vector<2x15xf32>
    %cst_43 = arith.constant dense<0.000000e+00> : vector<2x4xf32>
    %68 = tpu.matmul %67, %2, %cst_43 {dimension_numbers = #tpu.dot_dimension_numbers<[1], [0], [0], [1], [0, 0, 1, 1], [], []>, precision = #tpu.contract_precision<fp32>} : vector<2x15xf32>, vector<15x4xf32>, vector<2x4xf32> -> vector<2x4xf32>
    %cst_44 = arith.constant 5.000000e-01 : f32
    %69 = vector.broadcast %cst_44 : f32 to vector<2x4xf32>
    %70 = arith.mulf %69, %68 : vector<2x4xf32>
    %c5 = arith.constant 5 : index
    %c0_45 = arith.constant 0 : index
    %c0_46 = arith.constant 0 : index
    %71 = vector.load %arg6[%c5, %c0_45, %c0_46] : memref<10x2x4xf32, #tpu.memory_space<vmem>>, vector<1x2x4xf32>
    %72 = vector.shape_cast %71 : vector<1x2x4xf32> to vector<2x4xf32>
    %73 = vector.shape_cast %70 : vector<2x4xf32> to vector<1x2x4xf32>
    tpu.vector_store %arg6[%c5, %c0_45, %c0_46], %73 {strides = array<i32>} : memref<10x2x4xf32, #tpu.memory_space<vmem>>, vector<1x2x4xf32>,
    %74 = arith.mulf %13, %55 : vector<2x15xf32>
    %75 = arith.mulf %52, %16 : vector<2x15xf32>
    %76 = arith.subf %74, %75 : vector<2x15xf32>
    %cst_47 = arith.constant dense<0.000000e+00> : vector<2x4xf32>
    %77 = tpu.matmul %76, %2, %cst_47 {dimension_numbers = #tpu.dot_dimension_numbers<[1], [0], [0], [1], [0, 0, 1, 1], [], []>, precision = #tpu.contract_precision<fp32>} : vector<2x15xf32>, vector<15x4xf32>, vector<2x4xf32> -> vector<2x4xf32>
    %cst_48 = arith.constant 5.000000e-01 : f32
    %78 = vector.broadcast %cst_48 : f32 to vector<2x4xf32>
    %79 = arith.mulf %78, %77 : vector<2x4xf32>
    %c6 = arith.constant 6 : index
    %c0_49 = arith.constant 0 : index
    %c0_50 = arith.constant 0 : index
    %80 = vector.load %arg6[%c6, %c0_49, %c0_50] : memref<10x2x4xf32, #tpu.memory_space<vmem>>, vector<1x2x4xf32>
    %81 = vector.shape_cast %80 : vector<1x2x4xf32> to vector<2x4xf32>
    %82 = vector.shape_cast %79 : vector<2x4xf32> to vector<1x2x4xf32>
    tpu.vector_store %arg6[%c6, %c0_49, %c0_50], %82 {strides = array<i32>} : memref<10x2x4xf32, #tpu.memory_space<vmem>>, vector<1x2x4xf32>,
    %83 = arith.mulf %26, %42 : vector<2x15xf32>
    %84 = arith.mulf %39, %29 : vector<2x15xf32>
    %85 = arith.subf %83, %84 : vector<2x15xf32>
    %cst_51 = arith.constant dense<0.000000e+00> : vector<2x4xf32>
    %86 = tpu.matmul %85, %2, %cst_51 {dimension_numbers = #tpu.dot_dimension_numbers<[1], [0], [0], [1], [0, 0, 1, 1], [], []>, precision = #tpu.contract_precision<fp32>} : vector<2x15xf32>, vector<15x4xf32>, vector<2x4xf32> -> vector<2x4xf32>
    %cst_52 = arith.constant 5.000000e-01 : f32
    %87 = vector.broadcast %cst_52 : f32 to vector<2x4xf32>
    %88 = arith.mulf %87, %86 : vector<2x4xf32>
    %c7 = arith.constant 7 : index
    %c0_53 = arith.constant 0 : index
    %c0_54 = arith.constant 0 : index
    %89 = vector.load %arg6[%c7, %c0_53, %c0_54] : memref<10x2x4xf32, #tpu.memory_space<vmem>>, vector<1x2x4xf32>
    %90 = vector.shape_cast %89 : vector<1x2x4xf32> to vector<2x4xf32>
    %91 = vector.shape_cast %88 : vector<2x4xf32> to vector<1x2x4xf32>
    tpu.vector_store %arg6[%c7, %c0_53, %c0_54], %91 {strides = array<i32>} : memref<10x2x4xf32, #tpu.memory_space<vmem>>, vector<1x2x4xf32>,
    %92 = arith.mulf %26, %55 : vector<2x15xf32>
    %93 = arith.mulf %52, %29 : vector<2x15xf32>
    %94 = arith.subf %92, %93 : vector<2x15xf32>
    %cst_55 = arith.constant dense<0.000000e+00> : vector<2x4xf32>
    %95 = tpu.matmul %94, %2, %cst_55 {dimension_numbers = #tpu.dot_dimension_numbers<[1], [0], [0], [1], [0, 0, 1, 1], [], []>, precision = #tpu.contract_precision<fp32>} : vector<2x15xf32>, vector<15x4xf32>, vector<2x4xf32> -> vector<2x4xf32>
    %cst_56 = arith.constant 5.000000e-01 : f32
    %96 = vector.broadcast %cst_56 : f32 to vector<2x4xf32>
    %97 = arith.mulf %96, %95 : vector<2x4xf32>
    %c8 = arith.constant 8 : index
    %c0_57 = arith.constant 0 : index
    %c0_58 = arith.constant 0 : index
    %98 = vector.load %arg6[%c8, %c0_57, %c0_58] : memref<10x2x4xf32, #tpu.memory_space<vmem>>, vector<1x2x4xf32>
    %99 = vector.shape_cast %98 : vector<1x2x4xf32> to vector<2x4xf32>
    %100 = vector.shape_cast %97 : vector<2x4xf32> to vector<1x2x4xf32>
    tpu.vector_store %arg6[%c8, %c0_57, %c0_58], %100 {strides = array<i32>} : memref<10x2x4xf32, #tpu.memory_space<vmem>>, vector<1x2x4xf32>,
    %101 = arith.mulf %39, %55 : vector<2x15xf32>
    %102 = arith.mulf %52, %42 : vector<2x15xf32>
    %103 = arith.subf %101, %102 : vector<2x15xf32>
    %cst_59 = arith.constant dense<0.000000e+00> : vector<2x4xf32>
    %104 = tpu.matmul %103, %2, %cst_59 {dimension_numbers = #tpu.dot_dimension_numbers<[1], [0], [0], [1], [0, 0, 1, 1], [], []>, precision = #tpu.contract_precision<fp32>} : vector<2x15xf32>, vector<15x4xf32>, vector<2x4xf32> -> vector<2x4xf32>
    %cst_60 = arith.constant 5.000000e-01 : f32
    %105 = vector.broadcast %cst_60 : f32 to vector<2x4xf32>
    %106 = arith.mulf %105, %104 : vector<2x4xf32>
    %c9 = arith.constant 9 : index
    %c0_61 = arith.constant 0 : index
    %c0_62 = arith.constant 0 : index
    %107 = vector.load %arg6[%c9, %c0_61, %c0_62] : memref<10x2x4xf32, #tpu.memory_space<vmem>>, vector<1x2x4xf32>
    %108 = vector.shape_cast %107 : vector<1x2x4xf32> to vector<2x4xf32>
    %109 = vector.shape_cast %106 : vector<2x4xf32> to vector<1x2x4xf32>
    tpu.vector_store %arg6[%c9, %c0_61, %c0_62], %109 {strides = array<i32>} : memref<10x2x4xf32, #tpu.memory_space<vmem>>, vector<1x2x4xf32>,
    return
  }
  func.func @transform_0(%arg0: i32) -> (i32, i32, i32) {
    %c0_i32 = arith.constant 0 : i32
    %c0_i32_0 = arith.constant 0 : i32
    %c0_i32_1 = arith.constant 0 : i32
    return %c0_i32, %arg0, %c0_i32_0 : i32, i32, i32
  }
  func.func @transform_1(%arg0: i32) -> (i32, i32) {
    %c0_i32 = arith.constant 0 : i32
    %c0_i32_0 = arith.constant 0 : i32
    %c0_i32_1 = arith.constant 0 : i32
    return %c0_i32, %c0_i32_0 : i32, i32
  }
  func.func @transform_2(%arg0: i32) -> (i32, i32) {
    %c0_i32 = arith.constant 0 : i32
    %c0_i32_0 = arith.constant 0 : i32
    %c0_i32_1 = arith.constant 0 : i32
    return %c0_i32, %c0_i32_0 : i32, i32
  }
  func.func @transform_3(%arg0: i32) -> (i32, i32) {
    %c0_i32 = arith.constant 0 : i32
    %c0_i32_0 = arith.constant 0 : i32
    %c0_i32_1 = arith.constant 0 : i32
    return %c0_i32, %c0_i32_0 : i32, i32
  }
  func.func @transform_4(%arg0: i32) -> (i32, i32) {
    %c0_i32 = arith.constant 0 : i32
    %c0_i32_0 = arith.constant 0 : i32
    %c0_i32_1 = arith.constant 0 : i32
    return %c0_i32, %c0_i32_0 : i32, i32
  }
  func.func @transform_5(%arg0: i32) -> (i32, i32, i32) {
    %c0_i32 = arith.constant 0 : i32
    %c0_i32_0 = arith.constant 0 : i32
    %c0_i32_1 = arith.constant 0 : i32
    return %c0_i32, %arg0, %c0_i32_0 : i32, i32, i32
  }
}

</mosaic_0001>

<bundles_post_ra>
// kernel: tpu_custom_call.1
= control target key start
LH: loop header
LB: loop body
LE: loop exit
PB: predicated region body
PF: predicated region fallthrough
CT: control target
= control target key end

     0   :  { %vm28_vm0 = vcmask 130048   ;;  %s2995_s26 = smov 1   ;;  %vm356_vm1 = vcmask 1043456   ;;  %vm352_vm2 = vcmask 31744   ;;  %vm350_vm3 = vcmask 25600   ;;  %s3502_s1 = inlined_call_operand.vmem [shape: f32[16,4], index: 1, kind: input, shape index: {}]   ;;  %s3503_s0 = inlined_call_operand.vmem [shape: f32[4,2,16], index: 0, kind: input, shape index: {}]   ;;  %s3504_s2 = inlined_call_operand.vmem [shape: f32[16,4], index: 2, kind: input, shape index: {}]   ;;  %s3505_s4 = inlined_call_operand.vmem [shape: f32[4,15], index: 4, kind: input, shape index: {}]   ;;  %s3506_s5 = inlined_call_operand.vmem [shape: f32[10,2,4], index: 5, kind: output, shape index: {}]   ;;  %s3507_s3 = inlined_call_operand.vmem [shape: f32[15,4], index: 3, kind: input, shape index: {}]  }
   0x1   :  { %v21_v0 = vld [vmem:[%s3502_s1 + $0x8] sm:$0xff]  ;;  %v20_v1 = vld [vmem:[%s3502_s1] sm:$0xff]  ;;  %vm1963_vm4 = vcmask 1046528   ;;  %vm1959_vm5 = vcmask 121856  }
   0x2   :  { %v3036_v2 = vld [vmem:[%s3503_s0] sm:$0x3]  ;;  %v3038_v3 = vand.u32 4294901760, %v21_v0  ;;  %v3040_v4 = vand.u32 4294901760, %v20_v1  ;;  %v3047_v6 = vld [vmem:[%s3503_s0 + $0x4] sm:$0x3] }
   0x3   :  { %v30_v5 = vsel %vm28_vm0, %v3036_v2, 0  ;;  %507 = vrot.lane.b32.xlu0 %v3036_v2, %s2995_s26  ;;  %1465 = vrot.lane.b32.xlu1 %v3047_v6, %s2995_s26  ;;  %v23_v13 = vld [vmem:[%s3504_s2 + $0x8] sm:$0xff]  ;;  %v3079_v15 = vld [vmem:[%s3503_s0 + $0x2] sm:$0x3] }
   0x4   :  { %v3051_v7 = vand.u32 4294901760, %v30_v5  ;;  %v3056_v8 = vsub.f32 %v21_v0, %v3038_v3  ;;  %47 = vmatpush.msra.mxu0 %v3038_v3  ;;  %v3060_v9 = vsub.f32 %v20_v1, %v3040_v4  ;;  %131 = vmatpush.msra.mxu3 %v3038_v3  ;;  %v3090_v18 = vld [vmem:[%s3503_s0 + $0x6] sm:$0x3]  ;;  %v3092_v20 = vand.u32 4294901760, %v23_v13  ;;  %v26_v34 = vld [vmem:[%s3505_s4] sm:$0xf] }
   0x5   :  { %v22_v24 = vld [vmem:[%s3504_s2] sm:$0xff]  ;;  %v358_v35 = vsel %vm356_vm1, %v26_v34, 0  ;;  %v514_v46 = vsel %vm28_vm0, %v3079_v15, 0  ;;  %s2996_s4 = smov 127  }
   0x6   :  { %v51_v10 = vsub.f32 %v30_v5, %v3051_v7  ;;  %106 = vmatpush.msra.mxu2 %v3056_v8  ;;  %49 = vmatpush.msra.mxu0 %v3040_v4  ;;  %v3067_v11 = vand.u32 4294901760, %v3056_v8  ;;  %v3070_v12 = vand.u32 4294901760, %v3060_v9  ;;  %v3116_v25 = vsub.f32 %v23_v13, %v3092_v20 }
   0x7   :  { %133 = vmatpush.msra.mxu3 %v3040_v4  ;;  %v3118_v26 = vand.u32 4294901760, %v22_v24  ;;  %v3151_v36 = vand.u32 4294901760, %v358_v35  ;;  %v3179_v50 = vand.u32 4294901760, %v514_v46 }
   0x8   :  { %v52_v14 = vand.u32 4294901760, %v51_v10  ;;  %109 = vmatpush.msra.mxu2 %v3060_v9  ;;  %v76_v16 = vsub.f32 %v3056_v8, %v3067_v11  ;;  %158 = vmatpush.msrb.mxu0 %v3067_v11  ;;  %v82_v17 = vsub.f32 %v3060_v9, %v3070_v12  ;;  %v3121_v27 = vand.u32 4294901760, %v3116_v25 }
   0x9   :  { %112 = vmatmul.f32.vlgmr.msra.gmra.mxu2 %v51_v10  ;;  %v3125_v28 = vsub.f32 %v22_v24, %v3118_v26  ;;  %v3155_v37 = vsub.f32 %v358_v35, %v3151_v36  ;;  %v535_v57 = vsub.f32 %v514_v46, %v3179_v50 }
   0xa   :  { %v53_v19 = vsub.f32 %v51_v10, %v52_v14  ;;  %137 = vmatmul.f32.vlgmr.msra.gmra.mxu3 %v52_v14  ;;  %v3094_v21 = vand.u32 4294901760, %v76_v16  ;;  %v3096_v22 = vand.u32 4294901760, %v82_v17  ;;  %162 = vmatpush.msrb.mxu0 %v3070_v12  ;;  %v235_v29 = vsub.f32 %v3116_v25, %v3121_v27 }
   0xb   :  { %986 = vrot.lane.b32.xlu0 %v3079_v15, %s2995_s26  ;;  %1944 = vrot.lane.b32.xlu1 %v3090_v18, %s2995_s26  ;;  %v3132_v30 = vand.u32 4294901760, %v3125_v28  ;;  %v3161_v38 = vand.u32 4294901760, %v3155_v37  ;;  %v536_v62 = vand.u32 4294901760, %v535_v57 }
   0xc   :  { %v54_v23 = vand.u32 4294901760, %v53_v19  ;;  %206 = vmatpush.msrb.mxu2 %v3092_v20  ;;  %78 = vmatpush.msra.mxu1 %v3094_v21  ;;  %v3136_v31 = vand.u32 4294901760, %v235_v29 }
   0xd   :  { %v241_v32 = vsub.f32 %v3125_v28, %v3132_v30  ;;  %v404_v39 = vsub.f32 %v3155_v37, %v3161_v38  ;;  %v537_v5 = vsub.f32 %v535_v57, %v536_v62 }
   0xe   :  { %55 = vmatmul.f32.vlgmr.msra.gmra.mxu0 %v54_v23  ;;  %84 = vmatpush.msra.mxu1 %v3096_v22 }
   0xf   :  { %86 = vmatmul.f32.vlgmr.msra.gmra.mxu1 %v3051_v7  ;;  %208 = vmatpush.msrb.mxu2 %v3118_v26  ;;  %v3142_v33 = vand.u32 4294901760, %v241_v32  ;;  %v3169_v40 = vand.u32 4294901760, %v404_v39 }
  0x10   :  { %183 = vmatpush.msrb.mxu1 %v3038_v3  ;;  %265 = vmatpush.msra.mxu0 %v3116_v25 }
  0x11   :  { %214 = vmatmul.f32.vlgmr.msrb.gmra.mxu2 %v54_v23  ;;  %237 = vmatpush.msrb.mxu3 %v3136_v31 }
  0x12   :  { %185 = vmatpush.msrb.mxu1 %v3040_v4  ;;  %317 = vmatpush.msra.mxu2 %v3121_v27 }
  0x13   :  { %268 = vmatpush.msra.mxu0 %v3125_v28  ;;  %243 = vmatpush.msrb.mxu3 %v3142_v33 }
  0x14   :  { %290 = vmatpush.msra.mxu1 %v3092_v20  ;;  %321 = vmatpush.msra.mxu2 %v3132_v30 }
  0x15   :  { %245 = vmatmul.f32.vlgmr.msrb.gmra.mxu3 %v3051_v7 }
  0x16   :  { %164 = vmatmul.f32.vlgmr.msrb.gmra.mxu0 %v3051_v7  ;;  %292 = vmatpush.msra.mxu1 %v3118_v26 }
  0x17   :  { %187 = vmatmul.f32.vlgmr.msrb.gmra.mxu1 %v3051_v7  ;;  %342 = vmatpush.msra.mxu3 %v3092_v20 }
  0x18   :  { %376 = vmatpush.msrb.mxu0 %v3151_v36  ;;  %429 = vmatpush.msrb.mxu2 %v3155_v37 }
  0x19   :  { %323 = vmatmul.f32.vlgmr.msra.gmra.mxu2 %v3051_v7  ;;  %344 = vmatpush.msra.mxu3 %v3118_v26 }
  0x1a   :  { %531 = vmatpush.msra.mxu2 %v3038_v3  ;;  %406 = vmatpush.msrb.mxu1 %v3169_v40 }
  0x1b   :  { %452 = vmatpush.msrb.mxu3 %v3151_v36 }
  0x1c   :  { %533 = vmatpush.msra.mxu2 %v3040_v4 }
  0x1d   :  { %346 = vmatmul.f32.vlgmr.msra.gmra.mxu3 %v3051_v7 }
  0x1e   :  { %271 = vmatmul.f32.vlgmr.msra.gmra.mxu0 %v51_v10  ;;  %562 = vmatpush.msra.mxu3 %v3094_v21 }
  0x1f   :  { %296 = vmatmul.f32.vlgmr.msra.gmra.mxu1 %v52_v14  ;;  %478 = vmatpush.msra.mxu0 %v3161_v38  ;;  %v538_v14 = vand.u32 4294901760, %v537_v5 }
  0x20   :  { %568 = vmatpush.msra.mxu3 %v3096_v22  ;;  %500 = vmatpush.msra.mxu1 %v3151_v36 }
  0x75   :  { %v1466_v42 = vpop.permute.xlu1 %1465  ;;  %v508_v56 = vpop.permute.xlu0 %507 }
  0x76   :  { %v1468_v43 = vsub.f32 %v3047_v6, %v1466_v42  ;;  %v510_v16 = vsub.f32 %v3036_v2, %v508_v56  ;;  %v993_v56 = vsel %vm28_vm0, %v3047_v6, 0 }
  0x78   :  { %2130 = vrot.lane.b32.xlu0 %v1468_v43, %s2996_s4 }
  0x7d   :  { %v1945_v53 = vpop.permute.xlu1 %1944  ;;  %v987_v0 = vpop.permute.xlu0 %986 }
  0x7e   :  { %v1947_v55 = vsub.f32 %v3090_v18, %v1945_v53  ;;  %v989_v7 = vsub.f32 %v3079_v15, %v987_v0 }
  0x80   :  { %2302 = vrot.lane.b32.xlu1 %v1947_v55, %s2996_s4  ;;  %1949 = vrot.lane.b32.xlu2 %v989_v7, %s2996_s4 }
  0x88   :  { %1954 = vrot.lane.b32.xlu2 %v510_v16, %s2996_s4 }
  0x8b   :  { %v56_v41 = vpop.f32.mrf.mxu0 }
  0x8c   :  { %v87_v44 = vpop.f32.mrf.mxu1  ;;  %v113_v45 = vpop.f32.mrf.mxu2 }
  0x8d   :  { %v88_v47 = vadd.f32 %v87_v44, %v56_v41  ;;  %v138_v48 = vpop.f32.mrf.mxu3 }
  0x8f   :  { %v114_v49 = vadd.f32 %v113_v45, %v88_v47 }
  0x91   :  { %v139_v51 = vadd.f32 %v138_v48, %v114_v49 }
  0x93   :  { %v165_v52 = vpop.f32.mrf.mxu0 }
  0x94   :  { %v166_v54 = vadd.f32 %v165_v52, %v139_v51  ;;  %v188_v58 = vpop.f32.mrf.mxu1  ;;  %v215_v17 = vpop.f32.mrf.mxu2 }
  0x96   :  { %v189_v59 = vadd.f32 %v188_v58, %v166_v54 }
  0x98   :  { %v354_v60 = vsel %vm352_vm2, %v189_v59, 0  ;;  %v246_v19 = vpop.f32.mrf.mxu3 }
  0x99   :  { %v377_v61 = vand.u32 4294901760, %v354_v60  ;;  %v247_v24 = vadd.f32 %v246_v19, %v215_v17 }
  0x9b   :  { %v378_v63 = vsub.f32 %v354_v60, %v377_v61  ;;  %408 = vmatmul.f32.vlgmr.msrb.gmra.mxu1 %v377_v61  ;;  %v272_v23 = vpop.f32.mrf.mxu0 }
  0x9c   :  { %615 = vmatpush.msrb.mxu1 %v3038_v3  ;;  %v273_v29 = vadd.f32 %v272_v23, %v247_v24  ;;  %v297_v32 = vpop.f32.mrf.mxu1  ;;  %v324_v35 = vpop.f32.mrf.mxu2 }
  0x9d   :  { %432 = vmatmul.f32.vlgmr.msrb.gmra.mxu2 %v378_v63  ;;  %v379_v1 = vand.u32 4294901760, %v378_v63 }
  0x9e   :  { %642 = vmatpush.msrb.mxu2 %v3067_v11  ;;  %617 = vmatpush.msrb.mxu1 %v3040_v4  ;;  %v298_v34 = vadd.f32 %v297_v32, %v273_v29 }
  0x9f   :  { %456 = vmatmul.f32.vlgmr.msrb.gmra.mxu3 %v379_v1  ;;  %v380_v10 = vsub.f32 %v378_v63, %v379_v1 }
  0xa0   :  { %667 = vmatpush.msrb.mxu3 %v3038_v3  ;;  %646 = vmatpush.msrb.mxu2 %v3070_v12  ;;  %v325_v39 = vadd.f32 %v324_v35, %v298_v34  ;;  %v347_v41 = vpop.f32.mrf.mxu3 }
  0xa1   :  { %v381_v13 = vand.u32 4294901760, %v380_v10 }
  0xa2   :  { %669 = vmatpush.msrb.mxu3 %v3040_v4  ;;  %v348_v42 = vadd.f32 %v347_v41, %v325_v39 }
  0xa3   :  { %382 = vmatmul.f32.vlgmr.msrb.gmra.mxu0 %v381_v13  ;;  %502 = vmatmul.f32.vlgmr.msra.gmra.mxu1 %v377_v61 }
  0xa4   :  { %590 = vmatpush.msrb.mxu0 %v3056_v8  ;;  %721 = vmatpush.msra.mxu1 %v3136_v31  ;;  %351 = vst.msk [vmem:[%s3506_s5] sm:$0x3] %vm350_vm3, %v348_v42 }
  0xa5   :  { %539 = vmatmul.f32.vlgmr.msra.gmra.mxu2 %v538_v14 }
  0xa6   :  { %593 = vmatpush.msrb.mxu0 %v3060_v9  ;;  %727 = vmatpush.msra.mxu1 %v3142_v33 }
  0xa7   :  { %570 = vmatmul.f32.vlgmr.msra.gmra.mxu3 %v3179_v50  ;;  %749 = vmatpush.msra.mxu2 %v3116_v25 }
  0xa8   :  { %774 = vmatpush.msra.mxu3 %v3092_v20 }
  0xa9   :  { %752 = vmatpush.msra.mxu2 %v3125_v28 }
  0xaa   :  { %776 = vmatpush.msra.mxu3 %v3118_v26 }
  0xab   :  { %480 = vmatmul.f32.vlgmr.msra.gmra.mxu0 %v377_v61  ;;  %621 = vmatmul.f32.vlgmr.msrb.gmra.mxu1 %v536_v62  ;;  %v1013_v61 = vand.u32 4294901760, %v993_v56 }
  0xac   :  { %690 = vmatpush.msra.mxu0 %v3092_v20  ;;  %826 = vmatpush.msrb.mxu1 %v3092_v20 }
  0xad   :  { %648 = vmatmul.f32.vlgmr.msrb.gmra.mxu2 %v3179_v50  ;;  %v1014_v5 = vsub.f32 %v993_v56, %v1013_v61 }
  0xae   :  { %692 = vmatpush.msra.mxu0 %v3118_v26  ;;  %828 = vmatpush.msrb.mxu1 %v3118_v26 }
  0xaf   :  { %671 = vmatmul.f32.vlgmr.msrb.gmra.mxu3 %v3179_v50  ;;  %855 = vmatpush.msrb.mxu2 %v3151_v36 }
  0xb0   :  { %885 = vmatpush.msrb.mxu3 %v3169_v40 }
  0xb3   :  { %596 = vmatmul.f32.vlgmr.msrb.gmra.mxu0 %v535_v57  ;;  %729 = vmatmul.f32.vlgmr.msra.gmra.mxu1 %v3179_v50 }
  0xb4   :  { %801 = vmatpush.msrb.mxu0 %v3121_v27  ;;  %931 = vmatpush.msra.mxu1 %v3151_v36 }
  0xb5   :  { %755 = vmatmul.f32.vlgmr.msra.gmra.mxu2 %v535_v57 }
  0xb6   :  { %805 = vmatpush.msrb.mxu0 %v3132_v30  ;;  %957 = vmatpush.msra.mxu2 %v3161_v38 }
  0xb7   :  { %780 = vmatmul.f32.vlgmr.msra.gmra.mxu3 %v536_v62 }
  0xb8   :  { %979 = vmatpush.msra.mxu3 %v3151_v36 }
  0xbb   :  { %698 = vmatmul.f32.vlgmr.msra.gmra.mxu0 %v538_v14  ;;  %830 = vmatmul.f32.vlgmr.msrb.gmra.mxu1 %v3179_v50  ;;  %v1015_v14 = vand.u32 4294901760, %v1014_v5 }
  0xbc   :  { %908 = vmatpush.msra.mxu0 %v3155_v37  ;;  %1041 = vmatpush.msrb.mxu1 %v3094_v21 }
  0xbd   :  { %v1016_v19 = vsub.f32 %v1014_v5, %v1015_v14 }
  0xbe   :  { %1047 = vmatpush.msrb.mxu1 %v3096_v22 }
  0xbf   :  { %v1017_v29 = vand.u32 4294901760, %v1016_v19 }
  0xc3   :  { %807 = vmatmul.f32.vlgmr.msrb.gmra.mxu0 %v3179_v50 }
  0xc4   :  { %1010 = vmatpush.msrb.mxu0 %v3038_v3 }
  0xc6   :  { %1012 = vmatpush.msrb.mxu0 %v3040_v4 }
 0x118   :  { %v409_v43 = vpop.f32.mrf.mxu1 }
 0x120   :  { %v383_v44 = vpop.f32.mrf.mxu0  ;;  %v433_v45 = vpop.f32.mrf.mxu2 }
 0x121   :  { %v410_v46 = vadd.f32 %v409_v43, %v383_v44  ;;  %v503_v50 = vpop.f32.mrf.mxu1 }
 0x122   :  { %v457_v48 = vpop.f32.mrf.mxu3 }
 0x123   :  { %v434_v47 = vadd.f32 %v433_v45, %v410_v46 }
 0x125   :  { %v458_v49 = vadd.f32 %v457_v48, %v434_v47 }
 0x128   :  { %v481_v51 = vpop.f32.mrf.mxu0  ;;  %v540_v52 = vpop.f32.mrf.mxu2 }
 0x129   :  { %v482_v53 = vadd.f32 %v481_v51, %v458_v49  ;;  %v622_v59 = vpop.f32.mrf.mxu1  ;;  %v3268_v51 = vpop.permute.xlu2 %1949 }
 0x12a   :  { %v571_v55 = vpop.f32.mrf.mxu3 }
 0x12b   :  { %v3229_v54 = vadd.f32 %v503_v50, %v482_v53  ;;  %v572_v57 = vadd.f32 %v571_v55, %v540_v52 }
 0x130   :  { %v597_v58 = vpop.f32.mrf.mxu0  ;;  %v649_v62 = vpop.f32.mrf.mxu2 }
 0x131   :  { %v598_v60 = vadd.f32 %v597_v58, %v572_v57  ;;  %v730_v34 = vpop.f32.mrf.mxu1 }
 0x132   :  { %v672_v0 = vpop.f32.mrf.mxu3 }
 0x133   :  { %v623_v63 = vadd.f32 %v622_v59, %v598_v60  ;;  %v3272_v59 = vsub.f32 %v3036_v2, %v3229_v54 }
 0x135   :  { %v650_v1 = vadd.f32 %v649_v62, %v623_v63  ;;  %v3274_v62 = vpop.permute.xlu2 %1954 }
 0x137   :  { %v673_v7 = vadd.f32 %v672_v0, %v650_v1  ;;  %v1472_v0 = vsel %vm28_vm0, %v3090_v18, 0  ;;  %v3283_v1 = vmul.f32 %v3268_v51, %v3272_v59 }
 0x138   :  { %v699_v32 = vpop.f32.mrf.mxu0  ;;  %v756_v39 = vpop.f32.mrf.mxu2 }
 0x139   :  { %v837_v10 = vsel %vm352_vm2, %v673_v7, 0  ;;  %v731_v35 = vadd.f32 %v730_v34, %v699_v32  ;;  %v831_v46 = vpop.f32.mrf.mxu1 }
 0x13a   :  { %v856_v13 = vand.u32 4294901760, %v837_v10  ;;  %v781_v42 = vpop.f32.mrf.mxu3 }
 0x13b   :  { %v757_v41 = vadd.f32 %v756_v39, %v731_v35 }
 0x13c   :  { %v857_v16 = vsub.f32 %v837_v10, %v856_v13  ;;  %887 = vmatmul.f32.vlgmr.msrb.gmra.mxu3 %v856_v13 }
 0x13d   :  { %1094 = vmatpush.msrb.mxu3 %v3038_v3  ;;  %v782_v43 = vadd.f32 %v781_v42, %v757_v41 }
 0x13e   :  { %911 = vmatmul.f32.vlgmr.msra.gmra.mxu0 %v857_v16  ;;  %v858_v17 = vand.u32 4294901760, %v857_v16 }
 0x13f   :  { %1096 = vmatpush.msrb.mxu3 %v3040_v4  ;;  %1121 = vmatpush.msra.mxu0 %v3067_v11 }
 0x140   :  { %935 = vmatmul.f32.vlgmr.msra.gmra.mxu1 %v858_v17  ;;  %v859_v23 = vsub.f32 %v857_v16, %v858_v17  ;;  %v808_v44 = vpop.f32.mrf.mxu0 }
 0x141   :  { %1146 = vmatpush.msra.mxu1 %v3038_v3  ;;  %1125 = vmatpush.msra.mxu0 %v3070_v12  ;;  %v809_v45 = vadd.f32 %v808_v44, %v782_v43 }
 0x142   :  { %v860_v24 = vand.u32 4294901760, %v859_v23 }
 0x143   :  { %1148 = vmatpush.msra.mxu1 %v3040_v4  ;;  %v832_v47 = vadd.f32 %v831_v46, %v809_v45 }
 0x144   :  { %861 = vmatmul.f32.vlgmr.msrb.gmra.mxu2 %v860_v24  ;;  %981 = vmatmul.f32.vlgmr.msra.gmra.mxu3 %v856_v13 }
 0x145   :  { %1069 = vmatpush.msrb.mxu2 %v3056_v8  ;;  %1200 = vmatpush.msra.mxu3 %v3136_v31  ;;  %2982 = vst.msk [vmem:[%s3506_s5 + $0x2] sm:$0x3] %vm350_vm3, %v832_v47 }
 0x146   :  { %1018 = vmatmul.f32.vlgmr.msrb.gmra.mxu0 %v1017_v29 }
 0x147   :  { %1072 = vmatpush.msrb.mxu2 %v3060_v9  ;;  %1206 = vmatpush.msra.mxu3 %v3142_v33 }
 0x148   :  { %1049 = vmatmul.f32.vlgmr.msrb.gmra.mxu1 %v1013_v61  ;;  %1228 = vmatpush.msrb.mxu0 %v3116_v25 }
 0x149   :  { %1253 = vmatpush.msrb.mxu1 %v3092_v20 }
 0x14a   :  { %1231 = vmatpush.msrb.mxu0 %v3125_v28 }
 0x14b   :  { %1255 = vmatpush.msrb.mxu1 %v3118_v26 }
 0x14c   :  { %959 = vmatmul.f32.vlgmr.msra.gmra.mxu2 %v856_v13  ;;  %1100 = vmatmul.f32.vlgmr.msrb.gmra.mxu3 %v1015_v14 }
 0x14d   :  { %1169 = vmatpush.msra.mxu2 %v3092_v20  ;;  %1305 = vmatpush.msrb.mxu3 %v3092_v20 }
 0x14e   :  { %1127 = vmatmul.f32.vlgmr.msra.gmra.mxu0 %v1013_v61 }
 0x14f   :  { %1171 = vmatpush.msra.mxu2 %v3118_v26  ;;  %1307 = vmatpush.msrb.mxu3 %v3118_v26 }
 0x150   :  { %1150 = vmatmul.f32.vlgmr.msra.gmra.mxu1 %v1013_v61  ;;  %1334 = vmatpush.msra.mxu0 %v3151_v36 }
 0x151   :  { %1364 = vmatpush.msra.mxu1 %v3169_v40 }
 0x154   :  { %1075 = vmatmul.f32.vlgmr.msrb.gmra.mxu2 %v1014_v5  ;;  %1208 = vmatmul.f32.vlgmr.msra.gmra.mxu3 %v1013_v61 }
 0x155   :  { %1280 = vmatpush.msrb.mxu2 %v3121_v27  ;;  %1410 = vmatpush.msra.mxu3 %v3151_v36 }
 0x156   :  { %1234 = vmatmul.f32.vlgmr.msrb.gmra.mxu0 %v1014_v5 }
 0x157   :  { %1284 = vmatpush.msrb.mxu2 %v3132_v30  ;;  %1436 = vmatpush.msrb.mxu0 %v3161_v38 }
 0x158   :  { %1259 = vmatmul.f32.vlgmr.msrb.gmra.mxu1 %v1015_v14 }
 0x159   :  { %1458 = vmatpush.msrb.mxu1 %v3151_v36 }
 0x15c   :  { %1177 = vmatmul.f32.vlgmr.msra.gmra.mxu2 %v1017_v29  ;;  %1309 = vmatmul.f32.vlgmr.msrb.gmra.mxu3 %v1013_v61 }
 0x15d   :  { %1387 = vmatpush.msra.mxu2 %v3155_v37  ;;  %1520 = vmatpush.msrb.mxu3 %v3094_v21 }
 0x15f   :  { %1526 = vmatpush.msrb.mxu3 %v3096_v22 }
 0x164   :  { %1286 = vmatmul.f32.vlgmr.msrb.gmra.mxu2 %v1013_v61 }
 0x165   :  { %1489 = vmatpush.msrb.mxu2 %v3038_v3 }
 0x167   :  { %1491 = vmatpush.msrb.mxu2 %v3040_v4 }
 0x1bb   :  { %v912_v22 = vpop.f32.mrf.mxu0 }
 0x1bd   :  { %v936_v52 = vpop.f32.mrf.mxu1 }
 0x1bf   :  { %v888_v21 = vpop.f32.mrf.mxu3 }
 0x1c3   :  { %v1019_v55 = vpop.f32.mrf.mxu0 }
 0x1c5   :  { %v1050_v61 = vpop.f32.mrf.mxu1 }
 0x1c6   :  { %v1051_v5 = vadd.f32 %v1050_v61, %v1019_v55 }
 0x1c7   :  { %v862_v48 = vpop.f32.mrf.mxu2  ;;  %v982_v56 = vpop.f32.mrf.mxu3 }
 0x1c8   :  { %v889_v49 = vadd.f32 %v888_v21, %v862_v48 }
 0x1ca   :  { %v913_v50 = vadd.f32 %v912_v22, %v889_v49 }
 0x1cb   :  { %v1128_v14 = vpop.f32.mrf.mxu0 }
 0x1cc   :  { %v937_v53 = vadd.f32 %v936_v52, %v913_v50 }
 0x1cd   :  { %v1151_v17 = vpop.f32.mrf.mxu1 }
 0x1cf   :  { %v960_v57 = vpop.f32.mrf.mxu2  ;;  %v1101_v54 = vpop.f32.mrf.mxu3 }
 0x1d0   :  { %v961_v58 = vadd.f32 %v960_v57, %v937_v53 }
 0x1d2   :  { %v983_v60 = vadd.f32 %v982_v56, %v961_v58 }
 0x1d4   :  { %v3277_v63 = vsub.f32 %v3079_v15, %v983_v60  ;;  %v1492_v15 = vand.u32 4294901760, %v1472_v0 }
 0x1d6   :  { %v3287_v7 = vmul.f32 %v3274_v62, %v3277_v63  ;;  %v1493_v23 = vsub.f32 %v1472_v0, %v1492_v15 }
 0x1d7   :  { %v1076_v2 = vpop.f32.mrf.mxu2 }
 0x1d8   :  { %v1958_v10 = vsub.f32 %v3283_v1, %v3287_v7  ;;  %v1077_v13 = vadd.f32 %v1076_v2, %v1051_v5  ;;  %v1494_v34 = vand.u32 4294901760, %v1493_v23 }
 0x1da   :  { %v1102_v16 = vadd.f32 %v1101_v54, %v1077_v13  ;;  %v1495_v41 = vsub.f32 %v1493_v23, %v1494_v34  ;;  %v3359_v13 = vpop.permute.xlu0 %2130 }
 0x1dc   :  { %v1129_v19 = vadd.f32 %v1128_v14, %v1102_v16  ;;  %v1496_v44 = vand.u32 4294901760, %v1495_v41 }
 0x1de   :  { %v1152_v24 = vadd.f32 %v1151_v17, %v1129_v19 }
 0x1e0   :  { %v1316_v29 = vsel %vm352_vm2, %v1152_v24, 0 }
 0x1e1   :  { %v1335_v32 = vand.u32 4294901760, %v1316_v29 }
 0x1e3   :  { %v1336_v35 = vsub.f32 %v1316_v29, %v1335_v32  ;;  %1366 = vmatmul.f32.vlgmr.msra.gmra.mxu1 %v1335_v32 }
 0x1e4   :  { %1573 = vmatpush.msra.mxu1 %v3038_v3 }
 0x1e5   :  { %1390 = vmatmul.f32.vlgmr.msra.gmra.mxu2 %v1336_v35  ;;  %v1337_v39 = vand.u32 4294901760, %v1336_v35 }
 0x1e6   :  { %1600 = vmatpush.msra.mxu2 %v3067_v11  ;;  %1575 = vmatpush.msra.mxu1 %v3040_v4 }
 0x1e7   :  { %1414 = vmatmul.f32.vlgmr.msra.gmra.mxu3 %v1337_v39  ;;  %v1338_v42 = vsub.f32 %v1336_v35, %v1337_v39 }
 0x1e8   :  { %1625 = vmatpush.msra.mxu3 %v3038_v3  ;;  %1604 = vmatpush.msra.mxu2 %v3070_v12  ;;  %v1178_v3 = vpop.f32.mrf.mxu2  ;;  %v1260_v12 = vpop.f32.mrf.mxu1 }
 0x1e9   :  { %v1339_v43 = vand.u32 4294901760, %v1338_v42 }
 0x1ea   :  { %1627 = vmatpush.msra.mxu3 %v3040_v4  ;;  %v1209_v4 = vpop.f32.mrf.mxu3 }
 0x1eb   :  { %1340 = vmatmul.f32.vlgmr.msra.gmra.mxu0 %v1339_v43  ;;  %1460 = vmatmul.f32.vlgmr.msrb.gmra.mxu1 %v1335_v32 }
 0x1ec   :  { %1548 = vmatpush.msra.mxu0 %v3056_v8  ;;  %1679 = vmatpush.msrb.mxu1 %v3136_v31  ;;  %v1210_v8 = vadd.f32 %v1209_v4, %v1178_v3 }
 0x1ed   :  { %1497 = vmatmul.f32.vlgmr.msrb.gmra.mxu2 %v1496_v44 }
 0x1ee   :  { %1551 = vmatpush.msra.mxu0 %v3060_v9  ;;  %1685 = vmatpush.msrb.mxu1 %v3142_v33  ;;  %v1235_v9 = vpop.f32.mrf.mxu0 }
 0x1ef   :  { %1528 = vmatmul.f32.vlgmr.msrb.gmra.mxu3 %v1492_v15  ;;  %1707 = vmatpush.msrb.mxu2 %v3116_v25  ;;  %v1236_v11 = vadd.f32 %v1235_v9, %v1210_v8  ;;  %v2133_v9 = vmul.f32 %v3359_v13, %v3272_v59 }
 0x1f0   :  { %1732 = vmatpush.msrb.mxu3 %v3092_v20  ;;  %v1287_v25 = vpop.f32.mrf.mxu2 }
 0x1f1   :  { %1710 = vmatpush.msrb.mxu2 %v3125_v28 }
 0x1f2   :  { %1734 = vmatpush.msrb.mxu3 %v3118_v26 }
 0x1f3   :  { %1438 = vmatmul.f32.vlgmr.msrb.gmra.mxu0 %v1335_v32  ;;  %1579 = vmatmul.f32.vlgmr.msra.gmra.mxu1 %v1494_v34 }
 0x1f4   :  { %1648 = vmatpush.msrb.mxu0 %v3092_v20  ;;  %1784 = vmatpush.msra.mxu1 %v3092_v20  ;;  %v1261_v20 = vadd.f32 %v1260_v12, %v1236_v11 }
 0x1f5   :  { %1606 = vmatmul.f32.vlgmr.msra.gmra.mxu2 %v1492_v15 }
 0x1f6   :  { %1650 = vmatpush.msrb.mxu0 %v3118_v26  ;;  %1786 = vmatpush.msra.mxu1 %v3118_v26  ;;  %v1288_v26 = vadd.f32 %v1287_v25, %v1261_v20 }
 0x1f7   :  { %1629 = vmatmul.f32.vlgmr.msra.gmra.mxu3 %v1492_v15  ;;  %1813 = vmatpush.msra.mxu2 %v3151_v36 }
 0x1f8   :  { %1843 = vmatpush.msra.mxu3 %v3169_v40 }
 0x1fb   :  { %1554 = vmatmul.f32.vlgmr.msra.gmra.mxu0 %v1493_v23  ;;  %1687 = vmatmul.f32.vlgmr.msrb.gmra.mxu1 %v1492_v15 }
 0x1fc   :  { %1759 = vmatpush.msra.mxu0 %v3121_v27  ;;  %1889 = vmatpush.msrb.mxu1 %v3151_v36  ;;  %v1310_v27 = vpop.f32.mrf.mxu3 }
 0x1fd   :  { %1713 = vmatmul.f32.vlgmr.msrb.gmra.mxu2 %v1493_v23  ;;  %v1311_v28 = vadd.f32 %v1310_v27, %v1288_v26 }
 0x1fe   :  { %1763 = vmatpush.msra.mxu0 %v3132_v30  ;;  %1915 = vmatpush.msrb.mxu2 %v3161_v38  ;;  %v25_v30 = vld [vmem:[%s3507_s3 + $0x8] sm:$0x7f] }
 0x1ff   :  { %1738 = vmatmul.f32.vlgmr.msrb.gmra.mxu3 %v1494_v34  ;;  %2984 = vst.msk [vmem:[%s3506_s5 + $0x4] sm:$0x3] %vm350_vm3, %v1311_v28  ;;  %v1965_v31 = vsel %vm1963_vm4, %v25_v30, 0 }
 0x200   :  { %1937 = vmatpush.msrb.mxu3 %v3151_v36  ;;  %v3325_v33 = vand.u32 4294901760, %v1965_v31 }
 0x202   :  { %v3334_v40 = vsub.f32 %v1965_v31, %v3325_v33 }
 0x203   :  { %1656 = vmatmul.f32.vlgmr.msrb.gmra.mxu0 %v1496_v44  ;;  %1788 = vmatmul.f32.vlgmr.msra.gmra.mxu1 %v1492_v15 }
 0x204   :  { %1866 = vmatpush.msrb.mxu0 %v3155_v37  ;;  %v24_v37 = vld [vmem:[%s3507_s3] sm:$0xff]  ;;  %v3338_v47 = vand.u32 4294901760, %v3334_v40 }
 0x205   :  { %v3331_v38 = vand.u32 4294901760, %v24_v37 }
 0x206   :  { %v2011_v48 = vsub.f32 %v3334_v40, %v3338_v47 }
 0x207   :  { %v3341_v21 = vsub.f32 %v24_v37, %v3331_v38 }
 0x208   :  { %v3348_v53 = vand.u32 4294901760, %v2011_v48 }
 0x209   :  { %v3346_v49 = vand.u32 4294901760, %v3341_v21 }
 0x20a   :  { %2013 = vmatpush.msra.mxu1 %v3348_v53 }
 0x20b   :  { %1765 = vmatmul.f32.vlgmr.msra.gmra.mxu0 %v1492_v15  ;;  %v2017_v55 = vsub.f32 %v3341_v21, %v3346_v49  ;;  %v3363_v15 = vmul.f32 %v3359_v13, %v3277_v63 }
 0x20c   :  { %1982 = vmatpush.msra.mxu0 %v3325_v33 }
 0x20d   :  { %v3353_v56 = vand.u32 4294901760, %v2017_v55 }
 0x20e   :  { %1984 = vmatpush.msra.mxu0 %v3331_v38 }
 0x20f   :  { %2019 = vmatpush.msra.mxu1 %v3353_v56 }
 0x260   :  { %v1367_v36 = vpop.f32.mrf.mxu1 }
 0x268   :  { %v1341_v45 = vpop.f32.mrf.mxu0  ;;  %v1391_v46 = vpop.f32.mrf.mxu2 }
 0x269   :  { %v1368_v22 = vadd.f32 %v1367_v36, %v1341_v45  ;;  %v1461_v57 = vpop.f32.mrf.mxu1 }
 0x26a   :  { %v1415_v52 = vpop.f32.mrf.mxu3 }
 0x26b   :  { %v1392_v50 = vadd.f32 %v1391_v46, %v1368_v22 }
 0x26d   :  { %v1416_v58 = vadd.f32 %v1415_v52, %v1392_v50 }
 0x270   :  { %v1439_v60 = vpop.f32.mrf.mxu0  ;;  %v1498_v61 = vpop.f32.mrf.mxu2 }
 0x271   :  { %v1440_v0 = vadd.f32 %v1439_v60, %v1416_v58  ;;  %v1580_v19 = vpop.f32.mrf.mxu1 }
 0x272   :  { %v1529_v2 = vpop.f32.mrf.mxu3 }
 0x273   :  { %v1462_v5 = vadd.f32 %v1461_v57, %v1440_v0  ;;  %v1530_v16 = vadd.f32 %v1529_v2, %v1498_v61 }
 0x275   :  { %v3357_v54 = vsub.f32 %v3047_v6, %v1462_v5  ;;  %v1961_v6 = vsel %vm1959_vm5, %v1958_v10, 0 }
 0x276   :  { %v1985_v34 = vand.u32 4294901760, %v1961_v6 }
 0x277   :  { %v3367_v14 = vmul.f32 %v3268_v51, %v3357_v54  ;;  %v2134_v7 = vmul.f32 %v3274_v62, %v3357_v54 }
 0x278   :  { %v1555_v17 = vpop.f32.mrf.mxu0  ;;  %v1607_v29 = vpop.f32.mrf.mxu2  ;;  %v1986_v42 = vsub.f32 %v1961_v6, %v1985_v34 }
 0x279   :  { %v2475_v23 = vsub.f32 %v3363_v15, %v3367_v14  ;;  %v1556_v24 = vadd.f32 %v1555_v17, %v1530_v16  ;;  %v2135_v12 = vsub.f32 %v2133_v9, %v2134_v7  ;;  %v1688_v37 = vpop.f32.mrf.mxu1 }
 0x27a   :  { %v1630_v35 = vpop.f32.mrf.mxu3  ;;  %v1987_v4 = vand.u32 4294901760, %v1986_v42 }
 0x27b   :  { %v1581_v32 = vadd.f32 %v1580_v19, %v1556_v24  ;;  %v2137_v25 = vsel %vm1959_vm5, %v2135_v12, 0 }
 0x27c   :  { %v1988_v8 = vsub.f32 %v1986_v42, %v1987_v4  ;;  %v2157_v26 = vand.u32 4294901760, %v2137_v25 }
 0x27d   :  { %v1608_v39 = vadd.f32 %v1607_v29, %v1581_v32 }
 0x27e   :  { %v1989_v20 = vand.u32 4294901760, %v1988_v8  ;;  %v2158_v27 = vsub.f32 %v2137_v25, %v2157_v26 }
 0x27f   :  { %v1631_v41 = vadd.f32 %v1630_v35, %v1608_v39  ;;  %v2303_v39 = vpop.permute.xlu1 %2302 }
 0x280   :  { %v2159_v28 = vand.u32 4294901760, %v2158_v27  ;;  %v1657_v36 = vpop.f32.mrf.mxu0  ;;  %v1714_v46 = vpop.f32.mrf.mxu2 }
 0x281   :  { %v1795_v43 = vsel %vm352_vm2, %v1631_v41, 0  ;;  %v1689_v45 = vadd.f32 %v1688_v37, %v1657_v36  ;;  %v1789_v57 = vpop.f32.mrf.mxu1 }
 0x282   :  { %v1814_v44 = vand.u32 4294901760, %v1795_v43  ;;  %v2160_v30 = vsub.f32 %v2158_v27, %v2159_v28  ;;  %v1739_v48 = vpop.f32.mrf.mxu3 }
 0x283   :  { %v1715_v22 = vadd.f32 %v1714_v46, %v1689_v45  ;;  %v2641_v45 = vmul.f32 %v2303_v39, %v3277_v63 }
 0x284   :  { %v1815_v3 = vsub.f32 %v1795_v43, %v1814_v44  ;;  %1845 = vmatmul.f32.vlgmr.msra.gmra.mxu3 %v1814_v44  ;;  %v2161_v31 = vand.u32 4294901760, %v2160_v30 }
 0x285   :  { %2066 = vmatpush.msra.mxu3 %v3325_v33  ;;  %v1740_v50 = vadd.f32 %v1739_v48, %v1715_v22  ;;  %v2809_v48 = vmul.f32 %v2303_v39, %v3357_v54 }
 0x286   :  { %1869 = vmatmul.f32.vlgmr.msrb.gmra.mxu0 %v1815_v3  ;;  %v1816_v1 = vand.u32 4294901760, %v1815_v3 }
 0x287   :  { %2068 = vmatpush.msra.mxu3 %v3331_v38  ;;  %2093 = vmatpush.msrb.mxu0 %v3338_v47 }
 0x288   :  { %1893 = vmatmul.f32.vlgmr.msrb.gmra.mxu1 %v1816_v1  ;;  %v1817_v10 = vsub.f32 %v1815_v3, %v1816_v1  ;;  %v1766_v52 = vpop.f32.mrf.mxu0 }
 0x289   :  { %2097 = vmatpush.msrb.mxu0 %v3346_v49  ;;  %2118 = vmatpush.msrb.mxu1 %v3325_v33  ;;  %v1767_v55 = vadd.f32 %v1766_v52, %v1740_v50 }
 0x28a   :  { %v1818_v11 = vand.u32 4294901760, %v1817_v10 }
 0x28b   :  { %2120 = vmatpush.msrb.mxu1 %v3331_v38  ;;  %v1790_v58 = vadd.f32 %v1789_v57, %v1767_v55 }
 0x28c   :  { %1819 = vmatmul.f32.vlgmr.msra.gmra.mxu2 %v1818_v11  ;;  %1939 = vmatmul.f32.vlgmr.msrb.gmra.mxu3 %v1814_v44 }
 0x28d   :  { %2041 = vmatpush.msra.mxu2 %v3334_v40  ;;  %2185 = vmatpush.msrb.mxu3 %v3348_v53  ;;  %2986 = vst.msk [vmem:[%s3506_s5 + $0x6] sm:$0x3] %vm350_vm3, %v1790_v58 }
 0x28e   :  { %1990 = vmatmul.f32.vlgmr.msra.gmra.mxu0 %v1989_v20 }
 0x28f   :  { %2044 = vmatpush.msra.mxu2 %v3341_v21  ;;  %2191 = vmatpush.msrb.mxu3 %v3353_v56 }
 0x290   :  { %2021 = vmatmul.f32.vlgmr.msra.gmra.mxu1 %v1985_v34  ;;  %2213 = vmatpush.msra.mxu0 %v3334_v40 }
 0x291   :  { %2238 = vmatpush.msra.mxu1 %v3325_v33 }
 0x292   :  { %2216 = vmatpush.msra.mxu0 %v3341_v21 }
 0x293   :  { %2240 = vmatpush.msra.mxu1 %v3331_v38 }
 0x294   :  { %1917 = vmatmul.f32.vlgmr.msrb.gmra.mxu2 %v1814_v44  ;;  %2072 = vmatmul.f32.vlgmr.msra.gmra.mxu3 %v1987_v4  ;;  %v2305_v44 = vmul.f32 %v2303_v39, %v3272_v59 }
 0x295   :  { %2154 = vmatpush.msrb.mxu2 %v3325_v33  ;;  %2290 = vmatpush.msra.mxu3 %v3325_v33 }
 0x296   :  { %2099 = vmatmul.f32.vlgmr.msrb.gmra.mxu0 %v1985_v34 }
 0x297   :  { %2156 = vmatpush.msrb.mxu2 %v3331_v38  ;;  %2292 = vmatpush.msra.mxu3 %v3331_v38 }
 0x298   :  { %2122 = vmatmul.f32.vlgmr.msrb.gmra.mxu1 %v1985_v34  ;;  %2326 = vmatpush.msrb.mxu0 %v3325_v33  ;;  %v2477_v34 = vsel %vm1959_vm5, %v2475_v23, 0 }
 0x299   :  { %2357 = vmatpush.msrb.mxu1 %v3348_v53 }
 0x29a   :  { %2328 = vmatpush.msrb.mxu0 %v3331_v38 }
 0x29b   :  { %2363 = vmatpush.msrb.mxu1 %v3353_v56 }
 0x29c   :  { %2047 = vmatmul.f32.vlgmr.msra.gmra.mxu2 %v1986_v42  ;;  %2193 = vmatmul.f32.vlgmr.msrb.gmra.mxu3 %v2157_v26  ;;  %v3426_v42 = vand.u32 4294901760, %v2477_v34 }
 0x29d   :  { %2265 = vmatpush.msra.mxu2 %v3338_v47  ;;  %2410 = vmatpush.msrb.mxu3 %v3325_v33 }
 0x29e   :  { %2219 = vmatmul.f32.vlgmr.msra.gmra.mxu0 %v2158_v27  ;;  %v3431_v15 = vsub.f32 %v2477_v34, %v3426_v42 }
 0x29f   :  { %2269 = vmatpush.msra.mxu2 %v3346_v49  ;;  %2412 = vmatpush.msrb.mxu3 %v3331_v38 }
 0x2a0   :  { %2244 = vmatmul.f32.vlgmr.msra.gmra.mxu1 %v2159_v28  ;;  %2437 = vmatpush.msra.mxu0 %v3338_v47  ;;  %v2499_v59 = vand.u32 4294901760, %v3431_v15 }
 0x2a1   :  { %2462 = vmatpush.msra.mxu1 %v3325_v33 }
 0x2a2   :  { %2441 = vmatpush.msra.mxu0 %v3346_v49  ;;  %v2500_v37 = vsub.f32 %v3431_v15, %v2499_v59 }
 0x2a3   :  { %2464 = vmatpush.msra.mxu1 %v3331_v38 }
 0x2a4   :  { %2162 = vmatmul.f32.vlgmr.msrb.gmra.mxu2 %v2161_v31  ;;  %2294 = vmatmul.f32.vlgmr.msra.gmra.mxu3 %v2157_v26  ;;  %v2501_v63 = vand.u32 4294901760, %v2500_v37 }
 0x2a5   :  { %2385 = vmatpush.msrb.mxu2 %v3334_v40  ;;  %2525 = vmatpush.msra.mxu3 %v3348_v53 }
 0x2a7   :  { %2388 = vmatpush.msrb.mxu2 %v3341_v21  ;;  %2531 = vmatpush.msra.mxu3 %v3353_v56 }
 0x2ac   :  { %2271 = vmatmul.f32.vlgmr.msra.gmra.mxu2 %v2157_v26 }
 0x2ad   :  { %2494 = vmatpush.msra.mxu2 %v3325_v33 }
 0x2af   :  { %2496 = vmatpush.msra.mxu2 %v3331_v38 }
 0x303   :  { %v1870_v61 = vpop.f32.mrf.mxu0 }
 0x305   :  { %v1894_v0 = vpop.f32.mrf.mxu1 }
 0x307   :  { %v1846_v60 = vpop.f32.mrf.mxu3 }
 0x30b   :  { %v1991_v19 = vpop.f32.mrf.mxu0 }
 0x30d   :  { %v2022_v32 = vpop.f32.mrf.mxu1 }
 0x30e   :  { %v2023_v3 = vadd.f32 %v2022_v32, %v1991_v19 }
 0x30f   :  { %v1820_v5 = vpop.f32.mrf.mxu2  ;;  %v1940_v17 = vpop.f32.mrf.mxu3 }
 0x310   :  { %v1847_v2 = vadd.f32 %v1846_v60, %v1820_v5 }
 0x312   :  { %v1871_v16 = vadd.f32 %v1870_v61, %v1847_v2 }
 0x313   :  { %v2100_v1 = vpop.f32.mrf.mxu0 }
 0x314   :  { %v1895_v6 = vadd.f32 %v1894_v0, %v1871_v16 }
 0x315   :  { %v2123_v9 = vpop.f32.mrf.mxu1 }
 0x317   :  { %v1918_v24 = vpop.f32.mrf.mxu2  ;;  %v2073_v43 = vpop.f32.mrf.mxu3 }
 0x318   :  { %v1919_v29 = vadd.f32 %v1918_v24, %v1895_v6 }
 0x31a   :  { %v1941_v35 = vadd.f32 %v1940_v17, %v1919_v29 }
 0x31b   :  { %v2220_v31 = vpop.f32.mrf.mxu0 }
 0x31c   :  { %v1943_v41 = vsub.f32 %v3090_v18, %v1941_v35 }
 0x31d   :  { %v2245_v52 = vpop.f32.mrf.mxu1 }
 0x31e   :  { %v2306_v4 = vmul.f32 %v3274_v62, %v1943_v41  ;;  %v2642_v27 = vmul.f32 %v3268_v51, %v1943_v41  ;;  %v2810_v46 = vmul.f32 %v3359_v13, %v1943_v41 }
 0x31f   :  { %v2048_v7 = vpop.f32.mrf.mxu2  ;;  %v2194_v62 = vpop.f32.mrf.mxu3 }
 0x320   :  { %v2049_v10 = vadd.f32 %v2048_v7, %v2023_v3  ;;  %v2307_v8 = vsub.f32 %v2305_v44, %v2306_v4  ;;  %v2643_v50 = vsub.f32 %v2641_v45, %v2642_v27  ;;  %v2811_v13 = vsub.f32 %v2809_v48, %v2810_v46 }
 0x322   :  { %v2074_v14 = vadd.f32 %v2073_v43, %v2049_v10  ;;  %v2309_v23 = vsel %vm1959_vm5, %v2307_v8, 0  ;;  %v2645_v54 = vsel %vm1959_vm5, %v2643_v50, 0  ;;  %v2813_v61 = vsel %vm1959_vm5, %v2811_v13, 0 }
 0x323   :  { %v2329_v18 = vand.u32 4294901760, %v2309_v23  ;;  %v2665_v5 = vand.u32 4294901760, %v2645_v54  ;;  %v2833_v16 = vand.u32 4294901760, %v2813_v61 }
 0x324   :  { %v2101_v11 = vadd.f32 %v2100_v1, %v2074_v14 }
 0x325   :  { %2365 = vmatmul.f32.vlgmr.msrb.gmra.mxu1 %v2329_v18  ;;  %v2330_v12 = vsub.f32 %v2309_v23, %v2329_v18  ;;  %v2666_v17 = vsub.f32 %v2645_v54, %v2665_v5  ;;  %v2834_v19 = vsub.f32 %v2813_v61, %v2833_v16 }
 0x326   :  { %v2124_v20 = vadd.f32 %v2123_v9, %v2101_v11  ;;  %2578 = vmatpush.msrb.mxu1 %v3325_v33 }
 0x327   :  { %v2163_v25 = vpop.f32.mrf.mxu2  ;;  %2391 = vmatmul.f32.vlgmr.msrb.gmra.mxu2 %v2330_v12  ;;  %v2331_v26 = vand.u32 4294901760, %v2330_v12  ;;  %v2295_v60 = vpop.f32.mrf.mxu3  ;;  %v2667_v6 = vand.u32 4294901760, %v2666_v17  ;;  %v2835_v24 = vand.u32 4294901760, %v2834_v19 }
 0x328   :  { %v2126_v28 = vmul.f32 0.5, %v2124_v20  ;;  %v2195_v30 = vadd.f32 %v2194_v62, %v2163_v25  ;;  %2605 = vmatpush.msrb.mxu2 %v3338_v47  ;;  %2580 = vmatpush.msrb.mxu1 %v3331_v38 }
 0x329   :  { %2416 = vmatmul.f32.vlgmr.msrb.gmra.mxu3 %v2331_v26  ;;  %v2332_v36 = vsub.f32 %v2330_v12, %v2331_v26  ;;  %v2668_v29 = vsub.f32 %v2666_v17, %v2667_v6 }
 0x32a   :  { %2987 = vst.msk [vmem:[%s3506_s5 + $0x8] sm:$0x3] %vm350_vm3, %v2126_v28  ;;  %v2221_v51 = vadd.f32 %v2220_v31, %v2195_v30  ;;  %2630 = vmatpush.msrb.mxu3 %v3325_v33  ;;  %2609 = vmatpush.msrb.mxu2 %v3346_v49 }
 0x32b   :  { %v2333_v22 = vand.u32 4294901760, %v2332_v36 }
 0x32c   :  { %2632 = vmatpush.msrb.mxu3 %v3331_v38  ;;  %v2246_v55 = vadd.f32 %v2245_v52, %v2221_v51 }
 0x32d   :  { %2334 = vmatmul.f32.vlgmr.msrb.gmra.mxu0 %v2333_v22  ;;  %2466 = vmatmul.f32.vlgmr.msra.gmra.mxu1 %v2329_v18 }
 0x32e   :  { %2553 = vmatpush.msrb.mxu0 %v3334_v40  ;;  %2693 = vmatpush.msra.mxu1 %v3348_v53 }
 0x32f   :  { %v2272_v57 = vpop.f32.mrf.mxu2  ;;  %2502 = vmatmul.f32.vlgmr.msra.gmra.mxu2 %v2501_v63 }
 0x330   :  { %v2273_v58 = vadd.f32 %v2272_v57, %v2246_v55  ;;  %2556 = vmatpush.msrb.mxu0 %v3341_v21  ;;  %2721 = vmatpush.msra.mxu2 %v3334_v40 }
 0x331   :  { %2533 = vmatmul.f32.vlgmr.msra.gmra.mxu3 %v3426_v42  ;;  %2699 = vmatpush.msra.mxu1 %v3353_v56 }
 0x332   :  { %v2296_v0 = vadd.f32 %v2295_v60, %v2273_v58  ;;  %2746 = vmatpush.msra.mxu3 %v3325_v33  ;;  %2724 = vmatpush.msra.mxu2 %v3341_v21 }
 0x334   :  { %v2298_v2 = vmul.f32 0.5, %v2296_v0  ;;  %2748 = vmatpush.msra.mxu3 %v3331_v38 }
 0x335   :  { %2443 = vmatmul.f32.vlgmr.msra.gmra.mxu0 %v2329_v18  ;;  %2584 = vmatmul.f32.vlgmr.msrb.gmra.mxu1 %v2499_v59 }
 0x336   :  { %2988 = vst.msk [vmem:[%s3506_s5 + $0xa] sm:$0x3] %vm350_vm3, %v2298_v2  ;;  %2662 = vmatpush.msra.mxu0 %v3325_v33  ;;  %2798 = vmatpush.msrb.mxu1 %v3325_v33 }
 0x337   :  { %2611 = vmatmul.f32.vlgmr.msrb.gmra.mxu2 %v3426_v42 }
 0x338   :  { %2664 = vmatpush.msra.mxu0 %v3331_v38  ;;  %2830 = vmatpush.msrb.mxu2 %v3325_v33 }
 0x339   :  { %2634 = vmatmul.f32.vlgmr.msrb.gmra.mxu3 %v3426_v42  ;;  %2800 = vmatpush.msrb.mxu1 %v3331_v38 }
 0x33a   :  { %2861 = vmatpush.msrb.mxu3 %v3348_v53  ;;  %2832 = vmatpush.msrb.mxu2 %v3331_v38  ;;  %v2836_v53 = vsub.f32 %v2834_v19, %v2835_v24 }
 0x33c   :  { %2867 = vmatpush.msrb.mxu3 %v3353_v56  ;;  %v2669_v56 = vand.u32 4294901760, %v2668_v29  ;;  %v2837_v32 = vand.u32 4294901760, %v2836_v53 }
 0x33d   :  { %2559 = vmatmul.f32.vlgmr.msrb.gmra.mxu0 %v3431_v15  ;;  %2701 = vmatmul.f32.vlgmr.msra.gmra.mxu1 %v2665_v5 }
 0x33e   :  { %2773 = vmatpush.msrb.mxu0 %v3338_v47  ;;  %2914 = vmatpush.msra.mxu1 %v3325_v33 }
 0x33f   :  { %2727 = vmatmul.f32.vlgmr.msra.gmra.mxu2 %v2666_v17 }
 0x340   :  { %2777 = vmatpush.msrb.mxu0 %v3346_v49  ;;  %2941 = vmatpush.msra.mxu2 %v3338_v47 }
 0x341   :  { %2752 = vmatmul.f32.vlgmr.msra.gmra.mxu3 %v2667_v6  ;;  %2916 = vmatpush.msra.mxu1 %v3331_v38 }
 0x342   :  { %2966 = vmatpush.msra.mxu3 %v3325_v33  ;;  %2945 = vmatpush.msra.mxu2 %v3346_v49 }
 0x344   :  { %2968 = vmatpush.msra.mxu3 %v3331_v38 }
 0x345   :  { %2670 = vmatmul.f32.vlgmr.msra.gmra.mxu0 %v2669_v56  ;;  %2802 = vmatmul.f32.vlgmr.msrb.gmra.mxu1 %v2665_v5 }
 0x346   :  { %2889 = vmatpush.msra.mxu0 %v3334_v40 }
 0x347   :  { %2838 = vmatmul.f32.vlgmr.msrb.gmra.mxu2 %v2837_v32 }
 0x348   :  { %2892 = vmatpush.msra.mxu0 %v3341_v21 }
 0x349   :  { %2869 = vmatmul.f32.vlgmr.msrb.gmra.mxu3 %v2833_v16 }
 0x34d   :  { %2779 = vmatmul.f32.vlgmr.msrb.gmra.mxu0 %v2665_v5  ;;  %2920 = vmatmul.f32.vlgmr.msra.gmra.mxu1 %v2835_v24 }
 0x34f   :  { %2947 = vmatmul.f32.vlgmr.msra.gmra.mxu2 %v2833_v16 }
 0x351   :  { %2970 = vmatmul.f32.vlgmr.msra.gmra.mxu3 %v2833_v16 }
 0x355   :  { %2895 = vmatmul.f32.vlgmr.msra.gmra.mxu0 %v2834_v19 }
 0x3a2   :  { %v2366_v33 = vpop.f32.mrf.mxu1 }
 0x3aa   :  { %v2335_v47 = vpop.f32.mrf.mxu0  ;;  %v2392_v49 = vpop.f32.mrf.mxu2 }
 0x3ab   :  { %v2367_v34 = vadd.f32 %v2366_v33, %v2335_v47  ;;  %v2467_v35 = vpop.f32.mrf.mxu1 }
 0x3ac   :  { %v2417_v38 = vpop.f32.mrf.mxu3 }
 0x3ad   :  { %v2393_v39 = vadd.f32 %v2392_v49, %v2367_v34 }
 0x3af   :  { %v2418_v41 = vadd.f32 %v2417_v38, %v2393_v39 }
 0x3b2   :  { %v2444_v42 = vpop.f32.mrf.mxu0  ;;  %v2503_v43 = vpop.f32.mrf.mxu2 }
 0x3b3   :  { %v2445_v40 = vadd.f32 %v2444_v42, %v2418_v41  ;;  %v2585_v21 = vpop.f32.mrf.mxu1 }
 0x3b4   :  { %v2534_v44 = vpop.f32.mrf.mxu3 }
 0x3b5   :  { %v2468_v3 = vadd.f32 %v2467_v35, %v2445_v40  ;;  %v2535_v1 = vadd.f32 %v2534_v44, %v2503_v43 }
 0x3b7   :  { %v2470_v4 = vmul.f32 0.5, %v2468_v3 }
 0x3b9   :  { %2989 = vst.msk [vmem:[%s3506_s5 + $0xc] sm:$0x3] %vm350_vm3, %v2470_v4 }
 0x3ba   :  { %v2560_v7 = vpop.f32.mrf.mxu0  ;;  %v2612_v10 = vpop.f32.mrf.mxu2 }
 0x3bb   :  { %v2561_v8 = vadd.f32 %v2560_v7, %v2535_v1  ;;  %v2702_v9 = vpop.f32.mrf.mxu1 }
 0x3bc   :  { %v2635_v15 = vpop.f32.mrf.mxu3 }
 0x3bd   :  { %v2586_v14 = vadd.f32 %v2585_v21, %v2561_v8 }
 0x3bf   :  { %v2613_v23 = vadd.f32 %v2612_v10, %v2586_v14 }
 0x3c1   :  { %v2636_v18 = vadd.f32 %v2635_v15, %v2613_v23 }
 0x3c2   :  { %v2671_v11 = vpop.f32.mrf.mxu0  ;;  %v2728_v12 = vpop.f32.mrf.mxu2 }
 0x3c3   :  { %v2638_v59 = vmul.f32 0.5, %v2636_v18  ;;  %v2703_v20 = vadd.f32 %v2702_v9, %v2671_v11  ;;  %v2803_v27 = vpop.f32.mrf.mxu1 }
 0x3c4   :  { %v2753_v62 = vpop.f32.mrf.mxu3 }
 0x3c5   :  { %2990 = vst.msk [vmem:[%s3506_s5 + $0xe] sm:$0x3] %vm350_vm3, %v2638_v59  ;;  %v2729_v25 = vadd.f32 %v2728_v12, %v2703_v20 }
 0x3c7   :  { %v2754_v26 = vadd.f32 %v2753_v62, %v2729_v25 }
 0x3ca   :  { %v2780_v28 = vpop.f32.mrf.mxu0  ;;  %v2839_v31 = vpop.f32.mrf.mxu2 }
 0x3cb   :  { %v2781_v30 = vadd.f32 %v2780_v28, %v2754_v26  ;;  %v2921_v48 = vpop.f32.mrf.mxu1 }
 0x3cc   :  { %v2870_v37 = vpop.f32.mrf.mxu3 }
 0x3cd   :  { %v2804_v36 = vadd.f32 %v2803_v27, %v2781_v30  ;;  %v2871_v46 = vadd.f32 %v2870_v37, %v2839_v31 }
 0x3cf   :  { %v2806_v45 = vmul.f32 0.5, %v2804_v36 }
 0x3d1   :  { %2991 = vst.msk [vmem:[%s3506_s5 + $0x10] sm:$0x3] %vm350_vm3, %v2806_v45 }
 0x3d2   :  { %v2896_v51 = vpop.f32.mrf.mxu0  ;;  %v2948_v52 = vpop.f32.mrf.mxu2 }
 0x3d3   :  { %v2897_v22 = vadd.f32 %v2896_v51, %v2871_v46 }
 0x3d4   :  { %v2971_v13 = vpop.f32.mrf.mxu3 }
 0x3d5   :  { %v2922_v50 = vadd.f32 %v2921_v48, %v2897_v22 }
 0x3d7   :  { %v2949_v63 = vadd.f32 %v2948_v52, %v2922_v50 }
 0x3d9   :  { %v2972_v55 = vadd.f32 %v2971_v13, %v2949_v63 }
 0x3db   :  { %v2974_v57 = vmul.f32 0.5, %v2972_v55 }
 0x3dd   :  { %2992 = vst.msk [vmem:[%s3506_s5 + $0x12] sm:$0x3] %vm350_vm3, %v2974_v57 }

</bundles_post_ra>
